<compile_context>
chip_gen: v5e
topology: v5e:2x2
jax: 0.10.0
libtpu: 0.0.40
codegen_flags: <defaults>
</compile_context>

<pallas_src>
import jax
import jax.numpy as jnp
from jax.experimental import pallas as pl
from jax.experimental.pallas import tpu as pltpu

_TARGET_BLOCK_BYTES = 2 * 1024 * 1024  # ~2 MiB per buffer


def _identity_kernel(x_ref, o_ref):
    # Pure copy of the current VMEM tile.
    o_ref[...] = x_ref[...]


def identity(x):
    """Identity forward: returns x unchanged (same shape, dtype, values)."""
    orig_shape = x.shape
    n = x.size
    if n == 0:
        return x  # nothing to copy

    # --- Lane-dense 2D view --------------------------------------------------
    cols = None
    for c in (1024, 512, 256, 128):
        if n % c == 0:
            cols = c
            break
    if cols is not None:
        x2d = x.reshape(-1, cols)
    elif x.ndim >= 2:
        # Ragged total element count: keep the original last dim. A full-extent
        # lane block is always legal even when < 128 (masked stores).
        x2d = x.reshape(-1, orig_shape[-1])
    else:
        x2d = x.reshape(1, -1)
    R, C = x2d.shape
    itemsize = x.dtype.itemsize

    # --- Row tile: ~2 MiB blocks, sublane-packed rows, cdiv for ragged R -----
    max_rows = max(_TARGET_BLOCK_BYTES // max(C * itemsize, 1), 8)
    if R <= max_rows and R <= 1024:
        tr = R  # full row extent — always legal regardless of divisibility
    else:
        tr = min(1024, max_rows)
        # Multiple of 32 keeps f32(8)/bf16(16)/int8(32) sublane packing dense.
        tr = max((tr // 32) * 32, 32)
        if tr >= R:
            tr = R
    grid = (pl.cdiv(R, tr),)

    out2d = pl.pallas_call(
        _identity_kernel,
        out_shape=jax.ShapeDtypeStruct((R, C), x.dtype),
        grid_spec=pltpu.PrefetchScalarGridSpec(
            num_scalar_prefetch=0,
            grid=grid,
            in_specs=[pl.BlockSpec((tr, C), lambda i: (i, 0))],
            out_specs=pl.BlockSpec((tr, C), lambda i: (i, 0)),
        ),
        # Pure memory traffic: tell the XLA scheduler so it can overlap
        # neighbouring ops around this call.
        cost_estimate=pl.CostEstimate(
            flops=0, transcendentals=0, bytes_accessed=2 * n * itemsize),
        compiler_params=pltpu.CompilerParams(
            dimension_semantics=("parallel",),   # shard grid across TCs (v7x)
            vmem_limit_bytes=32 * 1024 * 1024,   # ample for <=8 MiB live bufs
        ),
    )(x2d)

    return out2d.reshape(orig_shape)


if __name__ == "__main__":
    key = jax.random.PRNGKey(0)
    # NCHW, matching PyTorch conv-style inputs: batch=2, channels=4, 16x16.
    x = jax.random.normal(key, (2, 4, 16, 16), dtype=jnp.float32)

    y = identity(x)
    y = jax.block_until_ready(y)

    assert y.shape == x.shape
    assert y.dtype == x.dtype
    assert bool(jnp.all(y == x))

    print("KERNEL_OK")
</pallas_src>

<mosaic_0001>
module attributes {stable_mosaic.version = 11 : i64} {
  func.func @_identity_kernel(%arg0: i32, %arg1: memref<2x1024xf32, #tpu.memory_space<vmem>>, %arg2: memref<2x1024xf32, #tpu.memory_space<vmem>>) attributes {dimension_semantics = [#tpu.dimension_semantics<parallel>], iteration_bounds = array<i64: 1>, scalar_prefetch = 0 : i64, scratch_operands = 0 : i64, tpu.core_type = #tpu.core_type<tc>, window_params = [{transform_indices = @transform_0, window_bounds = array<i64: 2, 1024>}, {transform_indices = @transform_1, window_bounds = array<i64: 2, 1024>}]} {
    %c0 = arith.constant 0 : index
    %c0_0 = arith.constant 0 : index
    %0 = vector.load %arg1[%c0, %c0_0] : memref<2x1024xf32, #tpu.memory_space<vmem>>, vector<2x1024xf32>
    %c0_1 = arith.constant 0 : index
    %c0_2 = arith.constant 0 : index
    %1 = vector.load %arg2[%c0_1, %c0_2] : memref<2x1024xf32, #tpu.memory_space<vmem>>, vector<2x1024xf32>
    tpu.vector_store %arg2[%c0_1, %c0_2], %0 {strides = array<i32>} : memref<2x1024xf32, #tpu.memory_space<vmem>>, vector<2x1024xf32>,
    return
  }
  func.func @transform_0(%arg0: i32) -> (i32, i32) {
    %c0_i32 = arith.constant 0 : i32
    %c0_i32_0 = arith.constant 0 : i32
    return %arg0, %c0_i32 : i32, i32
  }
  func.func @transform_1(%arg0: i32) -> (i32, i32) {
    %c0_i32 = arith.constant 0 : i32
    %c0_i32_0 = arith.constant 0 : i32
    return %arg0, %c0_i32 : i32, i32
  }
}

</mosaic_0001>

<bundles_post_ra>
// kernel: tpu_custom_call.1
= control target key start
LH: loop header
LB: loop body
LE: loop exit
PB: predicated region body
PF: predicated region fallthrough
CT: control target
= control target key end

     0   :  { %6 = vsyncpa [#allocation3], 0  ;;  %s116_s0 = inlined_call_operand.hbm [shape: f32[2,1024], index: 0, kind: input, shape index: {}]   ;;  %s117_s1 = inlined_call_operand.hbm [shape: f32[2,1024], index: 1, kind: output, shape index: {}]  }
   0x1   :  { %7 = vsyncpa [#allocation4], 0  ;;  %s13_s8 = sshll.u32 %s116_s0, 4  ;;  %s98_s9 = smov [#allocation2]   ;;  %s14_s8 = int_to_ptr.hbm [resolvable:$true] %s13_s8 }
   0x2   :  { %s15_s10 = sshll.u32 %s98_s9, 4  ;;  %s16_s10 = int_to_ptr.vmem [resolvable:$true] %s15_s10 }
   0x3   :  { %18 = dma.hbm_to_vmem [thread:$0]  %s14_s8, 256, %s16_s10, [#allocation3]  }
   0x4   :  { %94 = dma.done.wait [#allocation3], 256  }
   0x5   :  { %95 = vsyncadd [#allocation3], 4294967040  ;;  %s99_s11 = smov [#allocation5]   ;;  %s34_s15 = sshll.u32 %s117_s1, 4  ;;  %v23_v0 = vld [vmem:[#allocation2] sm:$0xff]  ;;  %v24_v1 = vld [vmem:[#allocation2 + $0x8] sm:$0xff]  ;;  %s35_s15 = int_to_ptr.hbm [resolvable:$true] %s34_s15 }
   0x6   :  { %s32_s12 = sshll.u32 %s99_s11, 4  ;;  %25 = vst [vmem:[#allocation5] sm:$0xff] %v23_v0  ;;  %s33_s12 = int_to_ptr.vmem [resolvable:$true] %s32_s12 }
   0x7   :  { %26 = vst [vmem:[#allocation5 + $0x8] sm:$0xff] %v24_v1 }
   0x8   :  { %37 = dma.vmem_to_hbm [thread:$0]  %s33_s12, 256, %s35_s15, [#allocation4]  }
   0x9   :  { %96 = dma.done.wait [#allocation4], 256  }
   0xa   :  { %97 = vsyncadd [#allocation4], 4294967040 }
   0xb   :  { %42 = vsyncpa [#allocation3], 1 }
   0xc   :  { %43 = vsyncpa [#allocation4], 1 }

</bundles_post_ra>
